<compile_context>
chip_gen: v7x
topology: tpu7x:2x2x1
jax: 0.10.0
libtpu: 0.0.40
codegen_flags: <defaults>
</compile_context>

<pallas_src>
import functools

import jax
import jax.numpy as jnp
from jax import lax
from jax.experimental import pallas as pl
from jax.experimental.pallas import tpu as pltpu

LANES = 128
# (4096, 128) f32 tile = 2 MiB per input.  Double-buffered 2xf32 + 1x(1-byte)
# inputs ~= 9 MiB plus elementwise intermediates (~12 MiB) stays comfortably
# under the 48 MiB scoped-VMEM limit below -- safe on v7x's 64 MiB VMEM while
# large enough to amortize the ~0.35 us per-grid-step overhead on all chips.
MAX_TILE_ROWS = 4096
VMEM_LIMIT_BYTES = 48 * 1024 * 1024


def _cdiv(a, b):
    return -(-a // b)


def _round_up(x, m):
    return _cdiv(x, m) * m


def _l1_inverse_kernel(pred_ref, invd_ref, mask_ref, sums_ref, *,
                       tile_rows, last_tile, valid_rows_last):
    """Reduce one (tile_rows, 128) block into resident (3, 128) lane partials.

    Row 0: sum(|inv_pred - inv_depth| * mask)
    Row 1: sum(mask)
    Row 2: sum(inv_pred)   (only used by the nan/inf fallback term, * 0.0)
    """
    i = pl.program_id(0)

    # Zero the resident accumulator at the start of the sweep.
    @pl.when(i == 0)
    def _():
        sums_ref[...] = jnp.zeros_like(sums_ref)

    pred = pred_ref[...]
    invd = invd_ref[...]
    # bf16 inputs are streamed as bf16 (5 B/elem of HBM traffic instead of 9)
    # and upcast here; f32 inputs pass straight through.
    if pred.dtype != jnp.float32:
        pred = pred.astype(jnp.float32)
    if invd.dtype != jnp.float32:
        invd = invd.astype(jnp.float32)

    msk = mask_ref[...]
    if msk.dtype == jnp.bool_:
        m0 = msk
    else:
        m0 = msk != 0
    # mask = logical_and(mask, inv_depth > 0)
    m0 = m0 & (invd > 0.0)

    def accumulate(row_valid):
        if row_valid is None:
            m = m0
            invd_safe = invd
        else:
            # Row-level guard for the single ragged last tile: rows past the
            # end of the array contain undefined VMEM and must not reach any
            # sum.  (Their inv_pred entries select -1 -- finite -- and only
            # ever feed the fallback term multiplied by 0.0.)
            m = m0 & row_valid
            invd_safe = jnp.where(row_valid, invd, 0.0)
        mf = m.astype(jnp.float32)
        # inv_pred = 1.0 / prediction * 10.0 ; inv_pred[~mask] = -1
        inv_pred = jnp.where(m, 10.0 / pred, -1.0)
        diff = jnp.abs(inv_pred - invd_safe) * mf
        # Sublane-reduce to lane-wise partials and do ONE full-block update.
        partial = jnp.concatenate(
            [jnp.sum(diff, axis=0, keepdims=True),
             jnp.sum(mf, axis=0, keepdims=True),
             jnp.sum(inv_pred, axis=0, keepdims=True)],
            axis=0)                                   # (3, 128)
        sums_ref[...] += partial

    if valid_rows_last is None:
        # Every tile is fully in-bounds: no per-element validity work at all.
        accumulate(None)
    else:
        is_full = i < last_tile

        @pl.when(is_full)
        def _():
            accumulate(None)

        @pl.when(jnp.logical_not(is_full))
        def _():
            row_iota = lax.broadcasted_iota(jnp.int32, (tile_rows, LANES), 0)
            accumulate(row_iota < valid_rows_last)


def l1_inverse_loss(prediction, inv_depth, mask, *, loss_weight=1.0, eps=1e-6):
    """Pallas implementation of L1InverseLoss.forward (returns a scalar f32)."""
    pred_f = prediction.reshape(-1)
    invd_f = inv_depth.reshape(-1)
    # Stream f32 / bf16 straight into the kernel (upcast in-kernel); anything
    # else is promoted once here.
    if pred_f.dtype not in (jnp.dtype(jnp.float32), jnp.dtype(jnp.bfloat16)):
        pred_f = pred_f.astype(jnp.float32)
    if invd_f.dtype not in (jnp.dtype(jnp.float32), jnp.dtype(jnp.bfloat16)):
        invd_f = invd_f.astype(jnp.float32)

    # Keep the mask as a 1-byte stream; bool/int8/uint8 are fed directly
    # (no wrapper-side astype pass).
    mask_f = mask.reshape(-1)
    if mask_f.dtype not in (jnp.dtype(jnp.bool_), jnp.dtype(jnp.int8),
                            jnp.dtype(jnp.uint8)):
        mask_f = mask_f != 0

    n = pred_f.shape[0]
    n_pad = _round_up(n, LANES)
    if n_pad != n:
        # Only when numel % 128 != 0 (<=127 extra elems).  Padded elements have
        # mask=0 so they contribute nothing to the diff/mask sums; their finite
        # -1 contribution to sum(inv_pred) only ever enters multiplied by 0.0.
        # TODO(synk): the pad still copies the arrays once in this rare case; a
        # manual-DMA 1-D path would avoid it, but typical NCHW inputs are
        # already 128-divisible.
        pad = n_pad - n
        pred_f = jnp.pad(pred_f, (0, pad), constant_values=1)
        invd_f = jnp.pad(invd_f, (0, pad), constant_values=0)
        mask_f = jnp.pad(mask_f, (0, pad), constant_values=0)

    rows = n_pad // LANES
    # Multiple of 32 keeps f32 (8,128), bf16 (16,128) and 1-byte (32,128)
    # tilings happy.
    tile_rows = min(MAX_TILE_ROWS, _round_up(rows, 32))
    num_tiles = _cdiv(rows, tile_rows)
    last_rows = rows - (num_tiles - 1) * tile_rows
    valid_rows_last = None if last_rows == tile_rows else last_rows

    pred2 = pred_f.reshape(rows, LANES)
    invd2 = invd_f.reshape(rows, LANES)
    mask2 = mask_f.reshape(rows, LANES)

    in_spec = pl.BlockSpec((tile_rows, LANES), lambda i: (i, 0))

    kernel = functools.partial(
        _l1_inverse_kernel,
        tile_rows=tile_rows,
        last_tile=num_tiles - 1,
        valid_rows_last=valid_rows_last,
    )

    sums = pl.pallas_call(
        kernel,
        out_shape=jax.ShapeDtypeStruct((3, LANES), jnp.float32),
        grid_spec=pltpu.PrefetchScalarGridSpec(
            num_scalar_prefetch=0,
            grid=(num_tiles,),
            in_specs=[in_spec, in_spec, in_spec],
            out_specs=pl.BlockSpec((3, LANES), lambda i: (0, 0)),
        ),
        compiler_params=pltpu.CompilerParams(
            dimension_semantics=("arbitrary",),
            vmem_limit_bytes=VMEM_LIMIT_BYTES,
        ),
    )(pred2, invd2, mask2)

    totals = jnp.sum(sums, axis=1)                # (3,) cross-lane reduce
    sum_diff, sum_mask, sum_invp = totals[0], totals[1], totals[2]

    loss = sum_diff / (sum_mask + eps)
    # torch's host-side isnan/isinf .item() branch -> data-dependent select.
    loss = jnp.where(jnp.isnan(loss) | jnp.isinf(loss), 0.0 * sum_invp, loss)
    return loss * jnp.float32(loss_weight)


def _reference(prediction, inv_depth, mask, loss_weight=1.0, eps=1e-6):
    """Pure-JAX reference mirroring the PyTorch module."""
    m = jnp.logical_and(mask, inv_depth > 0)
    inv_pred = (1.0 / prediction) * 10.0
    inv_pred = jnp.where(m, inv_pred, -1.0)
    diff = jnp.abs(inv_pred - inv_depth) * m.astype(jnp.float32)
    loss = jnp.sum(diff) / (jnp.sum(m.astype(jnp.float32)) + eps)
    loss = jnp.where(jnp.isnan(loss) | jnp.isinf(loss), 0.0 * jnp.sum(inv_pred), loss)
    return loss * loss_weight


if __name__ == "__main__":
    key = jax.random.PRNGKey(0)
    k1, k2, k3 = jax.random.split(key, 3)

    B, C, H, W = 2, 4, 16, 16  # NCHW, as in the PyTorch module
    prediction = jax.random.uniform(k1, (B, C, H, W), jnp.float32,
                                    minval=0.5, maxval=2.0)
    inv_depth = jax.random.uniform(k2, (B, C, H, W), jnp.float32,
                                   minval=-1.0, maxval=10.0)
    mask = jax.random.bernoulli(k3, 0.7, (B, C, H, W))  # bool, streamed as-is

    loss = l1_inverse_loss(prediction, inv_depth, mask, loss_weight=1.0)
    loss = jax.block_until_ready(loss)

    ref = _reference(prediction, inv_depth, mask, loss_weight=1.0)
    assert jnp.allclose(loss, ref, rtol=1e-5, atol=1e-5), (loss, ref)

    print("KERNEL_OK")
</pallas_src>

<mosaic_0001>
module attributes {stable_mosaic.version = 11 : i64} {
  func.func @_l1_inverse_kernel(%arg0: i32, %arg1: memref<32x128xf32, #tpu.memory_space<vmem>>, %arg2: memref<32x128xf32, #tpu.memory_space<vmem>>, %arg3: memref<32x128xi32, #tpu.memory_space<vmem>>, %arg4: memref<3x128xf32, #tpu.memory_space<vmem>>) attributes {dimension_semantics = [#tpu.dimension_semantics<arbitrary>], iteration_bounds = array<i64: 1>, scalar_prefetch = 0 : i64, scratch_operands = 0 : i64, tpu.core_type = #tpu.core_type<tc>, window_params = [{transform_indices = @transform_0, window_bounds = array<i64: 32, 128>}, {transform_indices = @transform_1, window_bounds = array<i64: 32, 128>}, {transform_indices = @transform_2, window_bounds = array<i64: 32, 128>}, {pipeline_mode = #tpu.pipeline_mode<synchronous>, transform_indices = @transform_3, window_bounds = array<i64: 3, 128>}]} {
    %c0_i32 = arith.constant 0 : i32
    %0 = arith.cmpi eq, %arg0, %c0_i32 : i32
    %1 = arith.extui %0 : i1 to i32
    %c0_i32_0 = arith.constant 0 : i32
    %2 = arith.cmpi ne, %1, %c0_i32_0 : i32
    scf.if %2 {
      %cst_10 = arith.constant 0.000000e+00 : f32
      %16 = vector.broadcast %cst_10 : f32 to vector<3x128xf32>
      %c0_11 = arith.constant 0 : index
      %c0_12 = arith.constant 0 : index
      %17 = vector.load %arg4[%c0_11, %c0_12] : memref<3x128xf32, #tpu.memory_space<vmem>>, vector<3x128xf32>
      tpu.vector_store %arg4[%c0_11, %c0_12], %16 {strides = array<i32>} : memref<3x128xf32, #tpu.memory_space<vmem>>, vector<3x128xf32>,
    } else {
    }
    %c0 = arith.constant 0 : index
    %c0_1 = arith.constant 0 : index
    %3 = vector.load %arg1[%c0, %c0_1] : memref<32x128xf32, #tpu.memory_space<vmem>>, vector<32x128xf32>
    %c0_2 = arith.constant 0 : index
    %c0_3 = arith.constant 0 : index
    %4 = vector.load %arg2[%c0_2, %c0_3] : memref<32x128xf32, #tpu.memory_space<vmem>>, vector<32x128xf32>
    %c0_4 = arith.constant 0 : index
    %c0_5 = arith.constant 0 : index
    %5 = vector.load %arg3[%c0_4, %c0_5] : memref<32x128xi32, #tpu.memory_space<vmem>>, vector<32x128xi32>
    %cst = arith.constant dense<0> : vector<32x128xi32>
    %6 = arith.cmpi ne, %5, %cst : vector<32x128xi32>
    %cst_6 = arith.constant 0.000000e+00 : f32
    %7 = vector.broadcast %cst_6 : f32 to vector<32x128xf32>
    %8 = arith.cmpf ogt, %4, %7 : vector<32x128xf32>
    %9 = arith.andi %6, %8 : vector<32x128xi1>
    %c0_i32_7 = arith.constant 0 : i32
    %10 = arith.cmpi slt, %arg0, %c0_i32_7 : i32
    %11 = arith.extui %10 : i1 to i32
    %c0_i32_8 = arith.constant 0 : i32
    %12 = arith.cmpi ne, %11, %c0_i32_8 : i32
    scf.if %12 {
      %16 = arith.extui %9 : vector<32x128xi1> to vector<32x128xi32>
      %17 = arith.sitofp %16 : vector<32x128xi32> to vector<32x128xf32>
      %cst_10 = arith.constant 1.000000e+01 : f32
      %18 = vector.broadcast %cst_10 : f32 to vector<32x128xf32>
      %19 = arith.divf %18, %3 : vector<32x128xf32>
      %cst_11 = arith.constant -1.000000e+00 : f32
      %20 = vector.broadcast %cst_11 : f32 to vector<32x128xf32>
      %21 = arith.select %9, %19, %20 : vector<32x128xi1>, vector<32x128xf32>
      %22 = arith.subf %21, %4 : vector<32x128xf32>
      %23 = math.absf %22 : vector<32x128xf32>
      %24 = arith.mulf %23, %17 : vector<32x128xf32>
      %cst_12 = arith.constant dense<0.000000e+00> : vector<128xf32>
      %25 = vector.multi_reduction <add>, %24, %cst_12 [0] : vector<32x128xf32> to vector<128xf32>
      %26 = vector.shape_cast %25 : vector<128xf32> to vector<1x128xf32>
      %cst_13 = arith.constant dense<0.000000e+00> : vector<128xf32>
      %27 = vector.multi_reduction <add>, %17, %cst_13 [0] : vector<32x128xf32> to vector<128xf32>
      %28 = vector.shape_cast %27 : vector<128xf32> to vector<1x128xf32>
      %cst_14 = arith.constant dense<0.000000e+00> : vector<128xf32>
      %29 = vector.multi_reduction <add>, %21, %cst_14 [0] : vector<32x128xf32> to vector<128xf32>
      %30 = vector.shape_cast %29 : vector<128xf32> to vector<1x128xf32>
      %31 = tpu.concatenate %26, %28, %30 in 0 : vector<1x128xf32>, vector<1x128xf32>, vector<1x128xf32> -> vector<3x128xf32>
      %c0_15 = arith.constant 0 : index
      %c0_16 = arith.constant 0 : index
      %32 = vector.load %arg4[%c0_15, %c0_16] : memref<3x128xf32, #tpu.memory_space<vmem>>, vector<3x128xf32>
      %33 = arith.addf %32, %31 : vector<3x128xf32>
      %c0_17 = arith.constant 0 : index
      %c0_18 = arith.constant 0 : index
      %34 = vector.load %arg4[%c0_17, %c0_18] : memref<3x128xf32, #tpu.memory_space<vmem>>, vector<3x128xf32>
      tpu.vector_store %arg4[%c0_17, %c0_18], %33 {strides = array<i32>} : memref<3x128xf32, #tpu.memory_space<vmem>>, vector<3x128xf32>,
    } else {
    }
    %true = arith.constant true
    %13 = arith.xori %10, %true : i1
    %14 = arith.extui %13 : i1 to i32
    %c0_i32_9 = arith.constant 0 : i32
    %15 = arith.cmpi ne, %14, %c0_i32_9 : i32
    scf.if %15 {
      %16 = tpu.iota {dimensions = array<i32: 0>} : vector<32x128xi32>
      %c16_i32 = arith.constant 16 : i32
      %17 = vector.broadcast %c16_i32 : i32 to vector<32x128xi32>
      %18 = arith.cmpi slt, %16, %17 : vector<32x128xi32>
      %19 = arith.andi %9, %18 : vector<32x128xi1>
      %cst_10 = arith.constant 0.000000e+00 : f32
      %20 = vector.broadcast %cst_10 : f32 to vector<32x128xf32>
      %21 = arith.select %18, %4, %20 : vector<32x128xi1>, vector<32x128xf32>
      %22 = arith.extui %19 : vector<32x128xi1> to vector<32x128xi32>
      %23 = arith.sitofp %22 : vector<32x128xi32> to vector<32x128xf32>
      %cst_11 = arith.constant 1.000000e+01 : f32
      %24 = vector.broadcast %cst_11 : f32 to vector<32x128xf32>
      %25 = arith.divf %24, %3 : vector<32x128xf32>
      %cst_12 = arith.constant -1.000000e+00 : f32
      %26 = vector.broadcast %cst_12 : f32 to vector<32x128xf32>
      %27 = arith.select %19, %25, %26 : vector<32x128xi1>, vector<32x128xf32>
      %28 = arith.subf %27, %21 : vector<32x128xf32>
      %29 = math.absf %28 : vector<32x128xf32>
      %30 = arith.mulf %29, %23 : vector<32x128xf32>
      %cst_13 = arith.constant dense<0.000000e+00> : vector<128xf32>
      %31 = vector.multi_reduction <add>, %30, %cst_13 [0] : vector<32x128xf32> to vector<128xf32>
      %32 = vector.shape_cast %31 : vector<128xf32> to vector<1x128xf32>
      %cst_14 = arith.constant dense<0.000000e+00> : vector<128xf32>
      %33 = vector.multi_reduction <add>, %23, %cst_14 [0] : vector<32x128xf32> to vector<128xf32>
      %34 = vector.shape_cast %33 : vector<128xf32> to vector<1x128xf32>
      %cst_15 = arith.constant dense<0.000000e+00> : vector<128xf32>
      %35 = vector.multi_reduction <add>, %27, %cst_15 [0] : vector<32x128xf32> to vector<128xf32>
      %36 = vector.shape_cast %35 : vector<128xf32> to vector<1x128xf32>
      %37 = tpu.concatenate %32, %34, %36 in 0 : vector<1x128xf32>, vector<1x128xf32>, vector<1x128xf32> -> vector<3x128xf32>
      %c0_16 = arith.constant 0 : index
      %c0_17 = arith.constant 0 : index
      %38 = vector.load %arg4[%c0_16, %c0_17] : memref<3x128xf32, #tpu.memory_space<vmem>>, vector<3x128xf32>
      %39 = arith.addf %38, %37 : vector<3x128xf32>
      %c0_18 = arith.constant 0 : index
      %c0_19 = arith.constant 0 : index
      %40 = vector.load %arg4[%c0_18, %c0_19] : memref<3x128xf32, #tpu.memory_space<vmem>>, vector<3x128xf32>
      tpu.vector_store %arg4[%c0_18, %c0_19], %39 {strides = array<i32>} : memref<3x128xf32, #tpu.memory_space<vmem>>, vector<3x128xf32>,
    } else {
    }
    return
  }
  func.func @transform_0(%arg0: i32) -> (i32, i32) {
    %c0_i32 = arith.constant 0 : i32
    %c0_i32_0 = arith.constant 0 : i32
    return %arg0, %c0_i32 : i32, i32
  }
  func.func @transform_1(%arg0: i32) -> (i32, i32) {
    %c0_i32 = arith.constant 0 : i32
    %c0_i32_0 = arith.constant 0 : i32
    return %arg0, %c0_i32 : i32, i32
  }
  func.func @transform_2(%arg0: i32) -> (i32, i32) {
    %c0_i32 = arith.constant 0 : i32
    %c0_i32_0 = arith.constant 0 : i32
    return %arg0, %c0_i32 : i32, i32
  }
  func.func @transform_3(%arg0: i32) -> (i32, i32) {
    %c0_i32 = arith.constant 0 : i32
    %c0_i32_0 = arith.constant 0 : i32
    %c0_i32_1 = arith.constant 0 : i32
    return %c0_i32, %c0_i32_0 : i32, i32
  }
}

</mosaic_0001>

<bundles_post_ra>
// kernel: tpu_custom_call.1
= control target key start
LH: loop header
LB: loop body
LE: loop exit
PB: predicated region body
PF: predicated region fallthrough
CT: control target
= control target key end

     0   :  { %8 = vsyncpa [#allocation3], 0  ;;  %s354_s0 = inlined_call_operand.vmem [shape: f32[16,128], index: 0, kind: input, shape index: {}]   ;;  %s355_s1 = inlined_call_operand.hbm [shape: f32[16,128], index: 1, kind: input, shape index: {}]   ;;  %s356_s2 = inlined_call_operand.vmem [shape: s32[16,128], index: 2, kind: input, shape index: {}]   ;;  %s357_s3 = inlined_call_operand.hbm [shape: f32[3,128], index: 3, kind: output, shape index: {}]  }
   0x1   :  { %9 = vsyncpa [#allocation4], 0 }
   0x2   :  { %16 = vsyncadd [#allocation3], 256  ;;  %s293_s12 = smov [#allocation2]   ;;  %s245_s16 = scalar_lea.hbm %s355_s1, 256 }
   0x3   :  { %s17_s13 = sshll.u32 %s293_s12, 4  ;;  %p246_p0 = scmp.ne.s32.totalorder %s355_s1, %s245_s16  ;;  %s18_s13 = int_to_ptr.vmem [resolvable:$true] %s17_s13 }
   0x4   :  { %p249_p1 = scmp.lt.u32.totalorder %s245_s16, %s355_s1 }
   0x6   :  { %p251_p2 = pnand %p249_p1, %p246_p0 }
   0x8   :  { %254 = shalt.err (!%p251_p2)
}
   0x9   :  { %s255_s21 = scalar_lea.vmem %s18_s13, 256  ;;  %s259_s22 = scalar_lea.vmem %s18_s13, 512 }
   0xa   :  { %p256_p3 = scmp.ne.s32.totalorder %s18_s13, %s255_s21  ;;  %p260_p4 = scmp.lt.s32.totalorder %s18_s13, %s18_s13 }
   0xb   :  { %p261_p5 = scmp.lt.s32.totalorder %s259_s22, %s255_s21 }
   0xd   :  { %p262_p6 = por %p261_p5, %p260_p4 }
   0xf   :  { %p263_p7 = pnand %p262_p6, %p256_p3 }
  0x11   :  { %266 = shalt.err (!%p263_p7)
}
  0x12   :  { %s294_s23 = smov 128   ;;  %s295_s24 = smov 8  }
  0x13   :  { %23 = dma.hbm_to_vmem [thread:$0]  %s355_s1, 256, %s18_s13, [#allocation3], %s294_s23, %s294_s23, %s295_s24  }
  0x14   :  { %289 = dma.done.wait [#allocation3], 512  }
  0x15   :  { %290 = vsyncadd [#allocation3], 4294966784  ;;  %v296_v0 = vmov 0.0   ;;  %v34_v1 = vld [vmem:[%s354_s0] sm:$0xff]  ;;  %v35_v2 = vld [vmem:[%s354_s0 + $0x8] sm:$0xff]  ;;  %vm208_vm6 = vcmask 1040384  }
  0x16   :  { %33 = vst [vmem:[#allocation5] sm:$0x7] %v296_v0  ;;  %v38_v3 = vld [vmem:[#allocation2] sm:$0xff]  ;;  %v39_v4 = vld [vmem:[#allocation2 + $0x8] sm:$0xff]  ;;  %241 = vrcp.f32 %v34_v1  ;;  %vm210_vm7 = vcmask 1041408   ;;  %s297_s0 = smov [#allocation5]  }
  0x17   :  { %v42_v5 = vld [vmem:[%s356_s2] sm:$0xff]  ;;  %v43_v6 = vld [vmem:[%s356_s2 + $0x8] sm:$0xff]  ;;  %vm50_vm1 = vcmp.gt.f32.partialorder %v38_v3, 0.0  ;;  %243 = vrcp.f32 %v35_v2  ;;  %vm51_vm3 = vcmp.gt.f32.partialorder %v39_v4, 0.0  ;;  %s221_s2 = sshll.u32 %s297_s0, 4  ;;  %s222_s2 = int_to_ptr.vmem [resolvable:$true] %s221_s2 }
  0x18   :  { %vm46_vm0 = vcmp.ne.s32.totalorder %v42_v5, 0  ;;  %vm47_vm2 = vcmp.ne.s32.totalorder %v43_v6, 0  ;;  %s267_s7 = scalar_lea.vmem %s222_s2, 64  ;;  %p272_p9 = scmp.lt.s32.totalorder %s222_s2, %s222_s2 }
  0x19   :  { %vm54_vm4 = vmand %vm46_vm0, %vm50_vm1  ;;  %p268_p8 = scmp.ne.s32.totalorder %s222_s2, %s267_s7  ;;  %p273_p10 = scmp.lt.s32.totalorder %s267_s7, %s267_s7 }
  0x1a   :  { %vm55_vm5 = vmand %vm47_vm2, %vm51_vm3  ;;  %v234_v7 = vsel %vm54_vm4, 1.0, %v296_v0 }
  0x1b   :  { %v235_v8 = vsel %vm55_vm5, 1.0, %v296_v0  ;;  %p274_p11 = por %p273_p10, %p272_p9 }
  0x1c   :  { %v190_v9 = vadd.f32 %v235_v8, %v234_v7 }
  0x1d   :  { %v212_v44 = vld [vmem:[#allocation5] sm:$0x7]  ;;  %p275_p12 = pnand %p274_p11, %p268_p8 }
  0x1e   :  { %v193_v13 = vrot.slane %v190_v9, 4 }
  0x20   :  { %v242_v10 = vpop.eup %241  ;;  %v194_v19 = vadd.f32 %v193_v13, %v190_v9 }
  0x21   :  { %v244_v11 = vpop.eup %243  ;;  %v158_v12 = vmul.f32 10.0, %v242_v10 }
  0x22   :  { %v160_v14 = vmul.f32 10.0, %v244_v11  ;;  %v195_v26 = vrot.slane %v194_v19, 2 }
  0x23   :  { %v165_v15 = vsel %vm54_vm4, %v158_v12, -1.0 }
  0x24   :  { %v166_v16 = vsel %vm55_vm5, %v160_v14, -1.0  ;;  %v169_v17 = vsub.f32 %v165_v15, %v38_v3  ;;  %v196_v31 = vadd.f32 %v195_v26, %v194_v19 }
  0x25   :  { %v170_v18 = vsub.f32 %v166_v16, %v39_v4  ;;  %v199_v20 = vadd.f32 %v166_v16, %v165_v15 }
  0x26   :  { %v173_v21 = vand.u32 2147483647, %v169_v17  ;;  %v197_v36 = vrot.slane %v196_v31, 1 }
  0x27   :  { %v174_v22 = vand.u32 2147483647, %v170_v18  ;;  %v200_v23 = vadd.f32 -1.0, %v199_v20 }
  0x28   :  { %v177_v24 = vmul.f32 %v234_v7, %v173_v21  ;;  %v198_v41 = vadd.f32 %v197_v36, %v196_v31 }
  0x29   :  { %v178_v25 = vmul.f32 %v235_v8, %v174_v22  ;;  %v201_v27 = vadd.f32 -1.0, %v200_v23 }
  0x2b   :  { %v181_v28 = vadd.f32 %v178_v25, %v177_v24  ;;  %v202_v29 = vrot.slane %v201_v27, 4 }
  0x2d   :  { %v184_v30 = vrot.slane %v181_v28, 4  ;;  %v203_v32 = vadd.f32 %v202_v29, %v201_v27 }
  0x2f   :  { %v185_v33 = vadd.f32 %v184_v30, %v181_v28  ;;  %v204_v34 = vrot.slane %v203_v32, 2 }
  0x31   :  { %v186_v35 = vrot.slane %v185_v33, 2  ;;  %v205_v37 = vadd.f32 %v204_v34, %v203_v32 }
  0x33   :  { %v187_v38 = vadd.f32 %v186_v35, %v185_v33  ;;  %v206_v39 = vrot.slane %v205_v37, 1 }
  0x35   :  { %v188_v40 = vrot.slane %v187_v38, 1  ;;  %v207_v42 = vadd.f32 %v206_v39, %v205_v37 }
  0x37   :  { %v189_v43 = vadd.f32 %v188_v40, %v187_v38 }
  0x39   :  { %v209_v45 = vsel %vm208_vm6, %v189_v43, %v198_v41 }
  0x3a   :  { %v211_v46 = vsel %vm210_vm7, %v209_v45, %v207_v42 }
  0x3b   :  { %v213_v47 = vadd.f32 %v212_v44, %v211_v46 }
  0x3d   :  { %214 = vst [vmem:[#allocation5] sm:$0x7] %v213_v47 }
  0x3e   :  { %278 = shalt.err (!%p275_p12)
}
  0x3f   :  { %s279_s10 = scalar_lea.hbm %s357_s3, 64 }
  0x40   :  { %p280_p13 = scmp.ne.s32.totalorder %s357_s3, %s279_s10  ;;  %p283_p0 = scmp.lt.u32.totalorder %s279_s10, %s357_s3 }
  0x42   :  { %p285_p1 = pnand %p283_p0, %p280_p13 }
  0x44   :  { %288 = shalt.err (!%p285_p1)
}
  0x45   :  { %224 = dma.vmem_to_hbm [thread:$0]  %s222_s2, 64, %s357_s3, [#allocation4]  }
  0x46   :  { %291 = dma.done.wait [#allocation4], 64  }
  0x47   :  { %292 = vsyncadd [#allocation4], 4294967232 }
  0x48   :  { %228 = vsyncpa [#allocation3], 1 }
  0x49   :  { %229 = vsyncpa [#allocation4], 1 }

</bundles_post_ra>
